<compile_context>
chip_gen: v5e
topology: v5e:2x2
jax: 0.10.0
libtpu: 0.0.40
codegen_flags: <defaults>
</compile_context>

<pallas_src>
import functools

import jax
import jax.numpy as jnp
from jax import lax
from jax.experimental import pallas as pl
from jax.experimental.pallas import tpu as pltpu

OBS_H, OBS_W, N_CLASSES = 11, 11, 8
N_POS = OBS_H * OBS_W                          # 121
N_POS_PAD = 128                                # lane-aligned position axis
K_TOTAL = N_CLASSES * N_POS_PAD                # 1024 fused-K for the encoder matmul
IN_FEATURES = N_POS * N_CLASSES                # 968 (logical)
HIDDEN_SIZE = 128
N_ACTIONS = 4                                  # Snake single_action_space.n
HEAD_WIDTH = 8                                 # 4 logits + 1 value + 3 zero pad columns

_INV_SQRT2 = 0.7071067811865476


def _snake_kernel(obs_ref, w1hi_ref, w1lo_ref, b1_ref, wh_ref, bh_ref, out_ref):
    """One batch tile: obs (TB, 128) int32 -> fused head output (TB, 8) f32."""
    obs = obs_ref[...]                                            # (TB, 128) int32, pad cols = 8

    # One-hot mask laid out lane-aligned along fused K: column c*128 + p <=> (obs[:, p] == c).
    # Sentinel-padded columns (value 8) match no class and contribute exactly zero.
    mask = jnp.concatenate([(obs == c) for c in range(N_CLASSES)], axis=1)
    mask = mask.astype(jnp.bfloat16)                              # {0,1} exact in bf16

    # Encoder: Linear(968 -> 128) at bf16 MXU rate; hi+lo weight split keeps f32 accuracy.
    # Accumulator is initialized with the broadcast bias (no extra VPU add pass).
    h = (b1_ref[...]
         + jnp.dot(mask, w1hi_ref[...], preferred_element_type=jnp.float32)
         + jnp.dot(mask, w1lo_ref[...], preferred_element_type=jnp.float32))

    # Exact (erf-based) GELU, matching torch nn.GELU() default.
    h = 0.5 * h * (1.0 + lax.erf(h * _INV_SQRT2))

    # Fused decoder + value heads: Linear(128 -> 8) in f32.
    out = jnp.dot(h, wh_ref[...], preferred_element_type=jnp.float32) + bh_ref[...]
    out_ref[...] = out.astype(out_ref.dtype)


def _round_up(x, m):
    return ((x + m - 1) // m) * m


@functools.partial(jax.jit, static_argnames=("block_b",))
def snake_forward(obs, params, *, block_b=2048):
    """obs: (B, 11, 11) integer observations. Returns (logits (B,4), value (B,1)) f32."""
    B = obs.shape[0]
    obs_flat = obs.reshape(B, N_POS).astype(jnp.int32)
    # Pad positions 121 -> 128 with sentinel class 8 (never matches -> zero mask columns).
    obs_flat = jnp.pad(obs_flat, ((0, 0), (0, N_POS_PAD - N_POS)),
                       constant_values=N_CLASSES)

    # ---- parameter packing (constant-folded under jit) ------------------------------
    # w1 is stored (in_features, out_features) = (968, 128) with row index p*8 + c;
    # permute to (class, position, hidden), pad positions to 128, then flatten so the
    # encoder weight row index is c*128 + p (matching the mask layout above).
    w1 = params["w1"].reshape(N_POS, N_CLASSES, HIDDEN_SIZE).transpose(1, 0, 2)
    w1 = jnp.pad(w1, ((0, 0), (0, N_POS_PAD - N_POS), (0, 0)))
    w1 = w1.reshape(K_TOTAL, HIDDEN_SIZE)
    w1_hi = w1.astype(jnp.bfloat16)
    w1_lo = (w1 - w1_hi.astype(jnp.float32)).astype(jnp.bfloat16)
    b1 = params["b1"].reshape(1, HIDDEN_SIZE)
    wh = jnp.concatenate(
        [params["wd"], params["wv"],
         jnp.zeros((HIDDEN_SIZE, HEAD_WIDTH - N_ACTIONS - 1), jnp.float32)], axis=1)
    bh = jnp.concatenate(
        [params["bd"].reshape(1, N_ACTIONS), params["bv"].reshape(1, 1),
         jnp.zeros((1, HEAD_WIDTH - N_ACTIONS - 1), jnp.float32)], axis=1)

    # ---- batch tiling: balanced tiles; >=2 grid steps when possible (v7x megacore) --
    n_tiles = max(pl.cdiv(B, block_b), 2 if B > 8 else 1)
    tb = _round_up(pl.cdiv(B, n_tiles), 8)
    b_pad = _round_up(B, tb)
    if b_pad != B:
        obs_flat = jnp.pad(obs_flat, ((0, b_pad - B), (0, 0)),
                           constant_values=N_CLASSES)       # pad rows sliced off below
    grid = (b_pad // tb,)

    cost = pl.CostEstimate(
        flops=2 * b_pad * (2 * K_TOTAL * HIDDEN_SIZE + HIDDEN_SIZE * HEAD_WIDTH),
        transcendentals=b_pad * HIDDEN_SIZE,
        bytes_accessed=(obs_flat.size * 4 + w1_hi.size * 2 + w1_lo.size * 2
                        + b1.size * 4 + wh.size * 4 + bh.size * 4
                        + b_pad * HEAD_WIDTH * 4),
    )

    out = pl.pallas_call(
        _snake_kernel,
        out_shape=jax.ShapeDtypeStruct((b_pad, HEAD_WIDTH), jnp.float32),
        grid=grid,
        in_specs=[
            pl.BlockSpec((tb, N_POS_PAD), lambda i: (i, 0)),                   # streamed obs
            pl.BlockSpec((K_TOTAL, HIDDEN_SIZE), lambda i: (0, 0)),            # resident W1 hi
            pl.BlockSpec((K_TOTAL, HIDDEN_SIZE), lambda i: (0, 0)),            # resident W1 lo
            pl.BlockSpec((1, HIDDEN_SIZE), lambda i: (0, 0)),                  # resident b1
            pl.BlockSpec((HIDDEN_SIZE, HEAD_WIDTH), lambda i: (0, 0)),         # resident heads W
            pl.BlockSpec((1, HEAD_WIDTH), lambda i: (0, 0)),                   # resident heads b
        ],
        out_specs=pl.BlockSpec((tb, HEAD_WIDTH), lambda i: (i, 0)),
        compiler_params=pltpu.CompilerParams(dimension_semantics=("parallel",)),
        cost_estimate=cost,
    )(obs_flat, w1_hi, w1_lo, b1, wh, bh)

    logits = out[:B, :N_ACTIONS]
    value = out[:B, N_ACTIONS:N_ACTIONS + 1]
    return logits, value


def init_params(key):
    """Deterministic synthetic parameters with the module's shapes.

    encoder: Linear(968, 128)  (default torch init ~ U(+-1/sqrt(in)))
    decoder: layer_init(Linear(128, 4), std=0.01)  -> small weights, zero bias
    value:   layer_init(Linear(128, 1), std=1)     -> unit-scale weights, zero bias
    Weights are stored transposed, i.e. (in_features, out_features).
    """
    k1, k2, k3, k4 = jax.random.split(key, 4)
    bound = 1.0 / jnp.sqrt(float(IN_FEATURES))
    w1 = jax.random.uniform(k1, (IN_FEATURES, HIDDEN_SIZE), jnp.float32, -bound, bound)
    b1 = jax.random.uniform(k2, (1, HIDDEN_SIZE), jnp.float32, -bound, bound)
    wd = 0.01 * jax.random.normal(k3, (HIDDEN_SIZE, N_ACTIONS), jnp.float32)
    bd = jnp.zeros((1, N_ACTIONS), jnp.float32)
    wv = 1.0 * jax.random.normal(k4, (HIDDEN_SIZE, 1), jnp.float32)
    bv = jnp.zeros((1, 1), jnp.float32)
    return dict(w1=w1, b1=b1, wd=wd, bd=bd, wv=wv, bv=bv)


def _reference_forward(obs, params):
    """Pure-JAX reference for correctness checking (mirrors the torch module)."""
    B = obs.shape[0]
    x = jax.nn.one_hot(obs.reshape(B, N_POS), N_CLASSES,
                       dtype=jnp.float32).reshape(B, IN_FEATURES)
    h = x @ params["w1"] + params["b1"]
    h = 0.5 * h * (1.0 + lax.erf(h * _INV_SQRT2))
    logits = h @ params["wd"] + params["bd"]
    value = h @ params["wv"] + params["bv"]
    return logits, value


def _check(obs, params):
    logits, value = snake_forward(obs, params)
    jax.block_until_ready((logits, value))
    ref_logits, ref_value = _reference_forward(obs, params)
    B = obs.shape[0]
    assert logits.shape == (B, N_ACTIONS) and value.shape == (B, 1)
    assert jnp.allclose(logits, ref_logits, atol=1e-4, rtol=1e-4)
    assert jnp.allclose(value, ref_value, atol=1e-4, rtol=1e-4)


if __name__ == "__main__":
    key = jax.random.PRNGKey(0)
    pkey, okey = jax.random.split(key)
    params = init_params(pkey)

    # Small batch (single-tile path).
    obs = jax.random.randint(okey, (8, OBS_H, OBS_W), 0, N_CLASSES, dtype=jnp.int32)
    _check(obs, params)

    # Ragged batch (pad-and-slice path, 2 balanced tiles).
    obs2 = jax.random.randint(jax.random.PRNGKey(3), (13, OBS_H, OBS_W),
                              0, N_CLASSES, dtype=jnp.int32)
    _check(obs2, params)

    # Slightly larger ragged batch (multi-tile + row padding).
    obs3 = jax.random.randint(jax.random.PRNGKey(7), (33, OBS_H, OBS_W),
                              0, N_CLASSES, dtype=jnp.int32)
    _check(obs3, params)

    print("KERNEL_OK")
</pallas_src>

<mosaic_0001>
module attributes {stable_mosaic.version = 11 : i64} {
  func.func @_snake_kernel(%arg0: i32, %arg1: memref<8x128xi32, #tpu.memory_space<vmem>>, %arg2: memref<1024x128xbf16, #tpu.memory_space<vmem>>, %arg3: memref<1024x128xbf16, #tpu.memory_space<vmem>>, %arg4: memref<1x128xf32, #tpu.memory_space<vmem>>, %arg5: memref<128x8xf32, #tpu.memory_space<vmem>>, %arg6: memref<1x8xf32, #tpu.memory_space<vmem>>, %arg7: memref<8x8xf32, #tpu.memory_space<vmem>>) attributes {dimension_semantics = [#tpu.dimension_semantics<parallel>], iteration_bounds = array<i64: 1>, scalar_prefetch = 0 : i64, scratch_operands = 0 : i64, tpu.core_type = #tpu.core_type<tc>, window_params = [{transform_indices = @transform_0, window_bounds = array<i64: 8, 128>}, {pipeline_mode = #tpu.pipeline_mode<synchronous>, transform_indices = @transform_1, window_bounds = array<i64: 1024, 128>}, {pipeline_mode = #tpu.pipeline_mode<synchronous>, transform_indices = @transform_2, window_bounds = array<i64: 1024, 128>}, {pipeline_mode = #tpu.pipeline_mode<synchronous>, transform_indices = @transform_3, window_bounds = array<i64: 1, 128>}, {pipeline_mode = #tpu.pipeline_mode<synchronous>, transform_indices = @transform_4, window_bounds = array<i64: 128, 8>}, {pipeline_mode = #tpu.pipeline_mode<synchronous>, transform_indices = @transform_5, window_bounds = array<i64: 1, 8>}, {transform_indices = @transform_6, window_bounds = array<i64: 8, 8>}]} {
    %c0 = arith.constant 0 : index
    %c0_0 = arith.constant 0 : index
    %0 = vector.load %arg1[%c0, %c0_0] : memref<8x128xi32, #tpu.memory_space<vmem>>, vector<8x128xi32>
    %c0_i32 = arith.constant 0 : i32
    %1 = vector.broadcast %c0_i32 : i32 to vector<8x128xi32>
    %2 = arith.cmpi eq, %0, %1 : vector<8x128xi32>
    %c1_i32 = arith.constant 1 : i32
    %3 = vector.broadcast %c1_i32 : i32 to vector<8x128xi32>
    %4 = arith.cmpi eq, %0, %3 : vector<8x128xi32>
    %c2_i32 = arith.constant 2 : i32
    %5 = vector.broadcast %c2_i32 : i32 to vector<8x128xi32>
    %6 = arith.cmpi eq, %0, %5 : vector<8x128xi32>
    %c3_i32 = arith.constant 3 : i32
    %7 = vector.broadcast %c3_i32 : i32 to vector<8x128xi32>
    %8 = arith.cmpi eq, %0, %7 : vector<8x128xi32>
    %c4_i32 = arith.constant 4 : i32
    %9 = vector.broadcast %c4_i32 : i32 to vector<8x128xi32>
    %10 = arith.cmpi eq, %0, %9 : vector<8x128xi32>
    %c5_i32 = arith.constant 5 : i32
    %11 = vector.broadcast %c5_i32 : i32 to vector<8x128xi32>
    %12 = arith.cmpi eq, %0, %11 : vector<8x128xi32>
    %c6_i32 = arith.constant 6 : i32
    %13 = vector.broadcast %c6_i32 : i32 to vector<8x128xi32>
    %14 = arith.cmpi eq, %0, %13 : vector<8x128xi32>
    %c7_i32 = arith.constant 7 : i32
    %15 = vector.broadcast %c7_i32 : i32 to vector<8x128xi32>
    %16 = arith.cmpi eq, %0, %15 : vector<8x128xi32>
    %17 = tpu.concatenate %2, %4, %6, %8, %10, %12, %14, %16 in 1 : vector<8x128xi1>, vector<8x128xi1>, vector<8x128xi1>, vector<8x128xi1>, vector<8x128xi1>, vector<8x128xi1>, vector<8x128xi1>, vector<8x128xi1> -> vector<8x1024xi1>
    %18 = arith.extui %17 : vector<8x1024xi1> to vector<8x1024xi32>
    %19 = arith.sitofp %18 : vector<8x1024xi32> to vector<8x1024xf32>
    %20 = arith.truncf %19 : vector<8x1024xf32> to vector<8x1024xbf16>
    %c0_1 = arith.constant 0 : index
    %c0_2 = arith.constant 0 : index
    %21 = vector.load %arg4[%c0_1, %c0_2] : memref<1x128xf32, #tpu.memory_space<vmem>>, vector<1x128xf32>
    %c0_3 = arith.constant 0 : index
    %c0_4 = arith.constant 0 : index
    %22 = vector.load %arg2[%c0_3, %c0_4] : memref<1024x128xbf16, #tpu.memory_space<vmem>>, vector<1024x128xbf16>
    %cst = arith.constant dense<0.000000e+00> : vector<8x128xf32>
    %23 = tpu.matmul %20, %22, %cst {dimension_numbers = #tpu.dot_dimension_numbers<[1], [0], [0], [1], [0, 0, 1, 1], [], []>} : vector<8x1024xbf16>, vector<1024x128xbf16>, vector<8x128xf32> -> vector<8x128xf32>
    %24 = vector.broadcast %21 : vector<1x128xf32> to vector<8x128xf32>
    %25 = arith.addf %24, %23 : vector<8x128xf32>
    %c0_5 = arith.constant 0 : index
    %c0_6 = arith.constant 0 : index
    %26 = vector.load %arg3[%c0_5, %c0_6] : memref<1024x128xbf16, #tpu.memory_space<vmem>>, vector<1024x128xbf16>
    %cst_7 = arith.constant dense<0.000000e+00> : vector<8x128xf32>
    %27 = tpu.matmul %20, %26, %cst_7 {dimension_numbers = #tpu.dot_dimension_numbers<[1], [0], [0], [1], [0, 0, 1, 1], [], []>} : vector<8x1024xbf16>, vector<1024x128xbf16>, vector<8x128xf32> -> vector<8x128xf32>
    %28 = arith.addf %25, %27 : vector<8x128xf32>
    %cst_8 = arith.constant 5.000000e-01 : f32
    %29 = vector.broadcast %cst_8 : f32 to vector<8x128xf32>
    %30 = arith.mulf %29, %28 : vector<8x128xf32>
    %cst_9 = arith.constant 0.707106769 : f32
    %31 = vector.broadcast %cst_9 : f32 to vector<8x128xf32>
    %32 = arith.mulf %28, %31 : vector<8x128xf32>
    %33 = math.erf %32 : vector<8x128xf32>
    %cst_10 = arith.constant 1.000000e+00 : f32
    %34 = vector.broadcast %cst_10 : f32 to vector<8x128xf32>
    %35 = arith.addf %34, %33 : vector<8x128xf32>
    %36 = arith.mulf %30, %35 : vector<8x128xf32>
    %c0_11 = arith.constant 0 : index
    %c0_12 = arith.constant 0 : index
    %37 = vector.load %arg5[%c0_11, %c0_12] : memref<128x8xf32, #tpu.memory_space<vmem>>, vector<128x8xf32>
    %cst_13 = arith.constant dense<0.000000e+00> : vector<8x8xf32>
    %38 = tpu.matmul %36, %37, %cst_13 {dimension_numbers = #tpu.dot_dimension_numbers<[1], [0], [0], [1], [0, 0, 1, 1], [], []>} : vector<8x128xf32>, vector<128x8xf32>, vector<8x8xf32> -> vector<8x8xf32>
    %c0_14 = arith.constant 0 : index
    %c0_15 = arith.constant 0 : index
    %39 = vector.load %arg6[%c0_14, %c0_15] : memref<1x8xf32, #tpu.memory_space<vmem>>, vector<1x8xf32>
    %40 = vector.broadcast %39 : vector<1x8xf32> to vector<8x8xf32>
    %41 = arith.addf %38, %40 : vector<8x8xf32>
    %c0_16 = arith.constant 0 : index
    %c0_17 = arith.constant 0 : index
    %42 = vector.load %arg7[%c0_16, %c0_17] : memref<8x8xf32, #tpu.memory_space<vmem>>, vector<8x8xf32>
    tpu.vector_store %arg7[%c0_16, %c0_17], %41 {strides = array<i32>} : memref<8x8xf32, #tpu.memory_space<vmem>>, vector<8x8xf32>,
    return
  }
  func.func @transform_0(%arg0: i32) -> (i32, i32) {
    %c0_i32 = arith.constant 0 : i32
    %c0_i32_0 = arith.constant 0 : i32
    return %arg0, %c0_i32 : i32, i32
  }
  func.func @transform_1(%arg0: i32) -> (i32, i32) {
    %c0_i32 = arith.constant 0 : i32
    %c0_i32_0 = arith.constant 0 : i32
    %c0_i32_1 = arith.constant 0 : i32
    return %c0_i32, %c0_i32_0 : i32, i32
  }
  func.func @transform_2(%arg0: i32) -> (i32, i32) {
    %c0_i32 = arith.constant 0 : i32
    %c0_i32_0 = arith.constant 0 : i32
    %c0_i32_1 = arith.constant 0 : i32
    return %c0_i32, %c0_i32_0 : i32, i32
  }
  func.func @transform_3(%arg0: i32) -> (i32, i32) {
    %c0_i32 = arith.constant 0 : i32
    %c0_i32_0 = arith.constant 0 : i32
    %c0_i32_1 = arith.constant 0 : i32
    return %c0_i32, %c0_i32_0 : i32, i32
  }
  func.func @transform_4(%arg0: i32) -> (i32, i32) {
    %c0_i32 = arith.constant 0 : i32
    %c0_i32_0 = arith.constant 0 : i32
    %c0_i32_1 = arith.constant 0 : i32
    return %c0_i32, %c0_i32_0 : i32, i32
  }
  func.func @transform_5(%arg0: i32) -> (i32, i32) {
    %c0_i32 = arith.constant 0 : i32
    %c0_i32_0 = arith.constant 0 : i32
    %c0_i32_1 = arith.constant 0 : i32
    return %c0_i32, %c0_i32_0 : i32, i32
  }
  func.func @transform_6(%arg0: i32) -> (i32, i32) {
    %c0_i32 = arith.constant 0 : i32
    %c0_i32_0 = arith.constant 0 : i32
    return %arg0, %c0_i32 : i32, i32
  }
}

</mosaic_0001>

<bundles_post_ra>
// kernel: snake_forward.1
= control target key start
LH: loop header
LB: loop body
LE: loop exit
PB: predicated region body
PF: predicated region fallthrough
CT: control target
= control target key end

     0   :  { %v2070_v45 = vmov 1.0|1.0   ;;  %s2644_s1 = inlined_call_operand.vmem [shape: bf16[1024,128], index: 1, kind: input, shape index: {}]   ;;  %s2645_s0 = inlined_call_operand.vmem [shape: s32[8,128], index: 0, kind: input, shape index: {}]   ;;  %s2646_s2 = inlined_call_operand.vmem [shape: bf16[1024,128], index: 2, kind: input, shape index: {}]   ;;  %s2647_s3 = inlined_call_operand.vmem [shape: f32[1,128], index: 3, kind: input, shape index: {}]   ;;  %s2648_s5 = inlined_call_operand.vmem [shape: f32[1,8], index: 5, kind: input, shape index: {}]   ;;  %s2649_s4 = inlined_call_operand.vmem [shape: f32[128,8], index: 4, kind: input, shape index: {}]   ;;  %s2650_s6 = inlined_call_operand.vmem [shape: f32[8,8], index: 6, kind: output, shape index: {}]  }
   0x1   :  { %v1944_v0 = vld [vmem:[%s2644_s1 + $0x38] sm:$0xff]  ;;  %v1943_v4 = vld [vmem:[%s2644_s1 + $0x30] sm:$0xff]  ;;  %v1942_v8 = vld [vmem:[%s2644_s1 + $0x28] sm:$0xff] }
   0x2   :  { %v1952_v1 = vld [vmem:[%s2644_s1 + $0x78] sm:$0xff]  ;;  %569 = vmatpush.bf16.msra.mxu0 %v1944_v0  ;;  %v1951_v5 = vld [vmem:[%s2644_s1 + $0x70] sm:$0xff]  ;;  %v1950_v9 = vld [vmem:[%s2644_s1 + $0x68] sm:$0xff] }
   0x3   :  { %v1960_v2 = vld [vmem:[%s2644_s1 + $0xb8] sm:$0xff]  ;;  %582 = vmatpush.bf16.msra.mxu1 %v1952_v1  ;;  %v1959_v6 = vld [vmem:[%s2644_s1 + $0xb0] sm:$0xff]  ;;  %v1958_v10 = vld [vmem:[%s2644_s1 + $0xa8] sm:$0xff] }
   0x4   :  { %v1968_v3 = vld [vmem:[%s2644_s1 + $0xf8] sm:$0xff]  ;;  %595 = vmatpush.bf16.msra.mxu2 %v1960_v2  ;;  %v1967_v7 = vld [vmem:[%s2644_s1 + $0xf0] sm:$0xff]  ;;  %v1966_v11 = vld [vmem:[%s2644_s1 + $0xe8] sm:$0xff] }
   0x5   :  { %608 = vmatpush.bf16.msra.mxu3 %v1968_v3  ;;  %v1941_v12 = vld [vmem:[%s2644_s1 + $0x20] sm:$0xff]  ;;  %v1940_v16 = vld [vmem:[%s2644_s1 + $0x18] sm:$0xff]  ;;  %v1939_v20 = vld [vmem:[%s2644_s1 + $0x10] sm:$0xff] }
   0x6   :  { %570 = vmatpush.bf16.msra.mxu0 %v1943_v4  ;;  %v1949_v13 = vld [vmem:[%s2644_s1 + $0x60] sm:$0xff]  ;;  %v1948_v17 = vld [vmem:[%s2644_s1 + $0x58] sm:$0xff]  ;;  %v1947_v21 = vld [vmem:[%s2644_s1 + $0x50] sm:$0xff] }
   0x7   :  { %583 = vmatpush.bf16.msra.mxu1 %v1951_v5  ;;  %v1957_v14 = vld [vmem:[%s2644_s1 + $0xa0] sm:$0xff]  ;;  %v1956_v18 = vld [vmem:[%s2644_s1 + $0x98] sm:$0xff]  ;;  %v1955_v22 = vld [vmem:[%s2644_s1 + $0x90] sm:$0xff] }
   0x8   :  { %596 = vmatpush.bf16.msra.mxu2 %v1959_v6  ;;  %v1965_v15 = vld [vmem:[%s2644_s1 + $0xe0] sm:$0xff]  ;;  %v1964_v19 = vld [vmem:[%s2644_s1 + $0xd8] sm:$0xff]  ;;  %v1963_v23 = vld [vmem:[%s2644_s1 + $0xd0] sm:$0xff] }
   0x9   :  { %609 = vmatpush.bf16.msra.mxu3 %v1967_v7  ;;  %v1938_v24 = vld [vmem:[%s2644_s1 + $0x8] sm:$0xff]  ;;  %v2193_v28 = vld [vmem:[%s2645_s0] sm:$0xff]  ;;  %v1976_v33 = vld [vmem:[%s2644_s1 + $0x138] sm:$0xff] }
   0xa   :  { %571 = vmatpush.bf16.msra.mxu0 %v1942_v8  ;;  %v1946_v25 = vld [vmem:[%s2644_s1 + $0x48] sm:$0xff]  ;;  %v1937_v29 = vld [vmem:[%s2644_s1] sm:$0xff]  ;;  %vm26_vm0 = vcmp.eq.s32.totalorder %v2193_v28, 2  ;;  %vm24_vm1 = vcmp.eq.s32.totalorder %v2193_v28, 0  ;;  %v1984_v34 = vld [vmem:[%s2644_s1 + $0x178] sm:$0xff]  ;;  %vm27_vm2 = vcmp.eq.s32.totalorder %v2193_v28, 3 }
   0xb   :  { %584 = vmatpush.bf16.msra.mxu1 %v1950_v9  ;;  %v1954_v26 = vld [vmem:[%s2644_s1 + $0x88] sm:$0xff]  ;;  %v1945_v30 = vld [vmem:[%s2644_s1 + $0x40] sm:$0xff]  ;;  %v1992_v35 = vld [vmem:[%s2644_s1 + $0x1b8] sm:$0xff]  ;;  %vm25_vm4 = vcmp.eq.s32.totalorder %v2193_v28, 1  ;;  %vm30_vm8 = vcmp.eq.s32.totalorder %v2193_v28, 6  ;;  %vm28_vm9 = vcmp.eq.s32.totalorder %v2193_v28, 4 }
   0xc   :  { %597 = vmatpush.bf16.msra.mxu2 %v1958_v10  ;;  %v1962_v27 = vld [vmem:[%s2644_s1 + $0xc8] sm:$0xff]  ;;  %v1953_v31 = vld [vmem:[%s2644_s1 + $0x80] sm:$0xff]  ;;  %v2000_v36 = vld [vmem:[%s2644_s1 + $0x1f8] sm:$0xff]  ;;  %vm31_vm10 = vcmp.eq.s32.totalorder %v2193_v28, 7  ;;  %vm29_vm12 = vcmp.eq.s32.totalorder %v2193_v28, 5 }
   0xd   :  { %610 = vmatpush.bf16.msra.mxu3 %v1966_v11  ;;  %v1961_v32 = vld [vmem:[%s2644_s1 + $0xc0] sm:$0xff]  ;;  %vm2222_vm3 = vmpackc.low %vm26_vm0, %vm26_vm0  ;;  %v1975_v40 = vld [vmem:[%s2644_s1 + $0x130] sm:$0xff] }
   0xe   :  { %572 = vmatpush.bf16.msra.mxu0 %v1941_v12  ;;  %vm2227_vm5 = vmpackc.low %vm24_vm1, %vm24_vm1  ;;  %v1983_v41 = vld [vmem:[%s2644_s1 + $0x170] sm:$0xff]  ;;  %v1974_v46 = vld [vmem:[%s2644_s1 + $0x128] sm:$0xff] }
   0xf   :  { %585 = vmatpush.bf16.msra.mxu1 %v1949_v13  ;;  %vm2231_vm6 = vmpackc.low %vm27_vm2, %vm27_vm2  ;;  %v1991_v43 = vld [vmem:[%s2644_s1 + $0x1b0] sm:$0xff]  ;;  %v1982_v47 = vld [vmem:[%s2644_s1 + $0x168] sm:$0xff] }
  0x10   :  { %598 = vmatpush.bf16.msra.mxu2 %v1957_v14  ;;  %vm2241_vm7 = vmpackc.low %vm25_vm4, %vm25_vm4  ;;  %v1999_v44 = vld [vmem:[%s2644_s1 + $0x1f0] sm:$0xff]  ;;  %v1990_v48 = vld [vmem:[%s2644_s1 + $0x1a8] sm:$0xff]  ;;  %vm1378_vm4 = vcmask 64512  }
  0x11   :  { %611 = vmatpush.bf16.msra.mxu3 %v1965_v15  ;;  %v1998_v49 = vld [vmem:[%s2644_s1 + $0x1e8] sm:$0xff]  ;;  %v1973_v50 = vld [vmem:[%s2644_s1 + $0x120] sm:$0xff]  ;;  %v1972_v54 = vld [vmem:[%s2644_s1 + $0x118] sm:$0xff] }
  0x12   :  { %573 = vmatpush.bf16.msra.mxu0 %v1940_v16  ;;  %v1981_v51 = vld [vmem:[%s2644_s1 + $0x160] sm:$0xff]  ;;  %v1980_v55 = vld [vmem:[%s2644_s1 + $0x158] sm:$0xff]  ;;  %v1971_v58 = vld [vmem:[%s2644_s1 + $0x110] sm:$0xff] }
  0x13   :  { %586 = vmatpush.bf16.msra.mxu1 %v1948_v17  ;;  %v1989_v52 = vld [vmem:[%s2644_s1 + $0x1a0] sm:$0xff]  ;;  %v1988_v56 = vld [vmem:[%s2644_s1 + $0x198] sm:$0xff]  ;;  %v1979_v59 = vld [vmem:[%s2644_s1 + $0x150] sm:$0xff] }
  0x14   :  { %599 = vmatpush.bf16.msra.mxu2 %v1956_v18  ;;  %v1997_v53 = vld [vmem:[%s2644_s1 + $0x1e0] sm:$0xff]  ;;  %v1996_v57 = vld [vmem:[%s2644_s1 + $0x1d8] sm:$0xff]  ;;  %v1987_v60 = vld [vmem:[%s2644_s1 + $0x190] sm:$0xff] }
  0x15   :  { %612 = vmatpush.bf16.msra.mxu3 %v1964_v19  ;;  %v1995_v61 = vld [vmem:[%s2644_s1 + $0x1d0] sm:$0xff]  ;;  %v1970_v62 = vld [vmem:[%s2644_s1 + $0x108] sm:$0xff]  ;;  %v1969_v2 = vld [vmem:[%s2644_s1 + $0x100] sm:$0xff] }
  0x16   :  { %574 = vmatpush.bf16.msra.mxu0 %v1939_v20  ;;  %v1978_v63 = vld [vmem:[%s2644_s1 + $0x148] sm:$0xff]  ;;  %v1977_v3 = vld [vmem:[%s2644_s1 + $0x140] sm:$0xff]  ;;  %v2008_v6 = vld [vmem:[%s2646_s2 + $0x38] sm:$0xff] }
  0x17   :  { %587 = vmatpush.bf16.msra.mxu1 %v1947_v21  ;;  %v1986_v0 = vld [vmem:[%s2644_s1 + $0x188] sm:$0xff]  ;;  %v1985_v4 = vld [vmem:[%s2644_s1 + $0x180] sm:$0xff]  ;;  %v2016_v7 = vld [vmem:[%s2646_s2 + $0x78] sm:$0xff] }
  0x18   :  { %600 = vmatpush.bf16.msra.mxu2 %v1955_v22  ;;  %v1994_v1 = vld [vmem:[%s2644_s1 + $0x1c8] sm:$0xff]  ;;  %v1993_v5 = vld [vmem:[%s2644_s1 + $0x1c0] sm:$0xff]  ;;  %v2024_v8 = vld [vmem:[%s2646_s2 + $0xb8] sm:$0xff] }
  0x19   :  { %613 = vmatpush.bf16.msra.mxu3 %v1963_v23  ;;  %v2032_v9 = vld [vmem:[%s2646_s2 + $0xf8] sm:$0xff]  ;;  %vm2350_vm11 = vmpackc.low %vm30_vm8, %vm30_vm8  ;;  %v2007_v13 = vld [vmem:[%s2646_s2 + $0x30] sm:$0xff] }
  0x1a   :  { %575 = vmatpush.bf16.msra.mxu0 %v1938_v24  ;;  %vm2355_vm13 = vmpackc.low %vm28_vm9, %vm28_vm9  ;;  %v2015_v14 = vld [vmem:[%s2646_s2 + $0x70] sm:$0xff]  ;;  %v2006_v18 = vld [vmem:[%s2646_s2 + $0x28] sm:$0xff] }
  0x1b   :  { %588 = vmatpush.bf16.msra.mxu1 %v1946_v25  ;;  %vm2359_vm14 = vmpackc.low %vm31_vm10, %vm31_vm10  ;;  %v2023_v16 = vld [vmem:[%s2646_s2 + $0xb0] sm:$0xff]  ;;  %v2014_v19 = vld [vmem:[%s2646_s2 + $0x68] sm:$0xff] }
  0x1c   :  { %601 = vmatpush.bf16.msra.mxu2 %v1954_v26  ;;  %vm2369_vm15 = vmpackc.low %vm29_vm12, %vm29_vm12  ;;  %v2031_v17 = vld [vmem:[%s2646_s2 + $0xf0] sm:$0xff]  ;;  %v2022_v20 = vld [vmem:[%s2646_s2 + $0xa8] sm:$0xff] }
  0x1d   :  { %614 = vmatpush.bf16.msra.mxu3 %v1962_v27  ;;  %v2030_v21 = vld [vmem:[%s2646_s2 + $0xe8] sm:$0xff]  ;;  %v2005_v22 = vld [vmem:[%s2646_s2 + $0x20] sm:$0xff]  ;;  %v2004_v26 = vld [vmem:[%s2646_s2 + $0x18] sm:$0xff] }
  0x1e   :  { %576 = vmatpush.bf16.msra.mxu0 %v1937_v29  ;;  %v2013_v23 = vld [vmem:[%s2646_s2 + $0x60] sm:$0xff]  ;;  %v2012_v27 = vld [vmem:[%s2646_s2 + $0x58] sm:$0xff]  ;;  %v2046_v37 = vld [vmem:[%s2646_s2 + $0x168] sm:$0xff] }
  0x1f   :  { %589 = vmatpush.bf16.msra.mxu1 %v1945_v30  ;;  %v2021_v24 = vld [vmem:[%s2646_s2 + $0xa0] sm:$0xff]  ;;  %v2020_v28 = vld [vmem:[%s2646_s2 + $0x98] sm:$0xff]  ;;  %v2003_v30 = vld [vmem:[%s2646_s2 + $0x10] sm:$0xff] }
  0x20   :  { %602 = vmatpush.bf16.msra.mxu2 %v1953_v31  ;;  %v2029_v25 = vld [vmem:[%s2646_s2 + $0xe0] sm:$0xff]  ;;  %v2028_v29 = vld [vmem:[%s2646_s2 + $0xd8] sm:$0xff]  ;;  %v2011_v31 = vld [vmem:[%s2646_s2 + $0x50] sm:$0xff] }
  0x21   :  { %615 = vmatpush.bf16.msra.mxu3 %v1961_v32  ;;  %1649 = vmatmul.msk.bf16.vlgmr.msra.gmra.mxu0 %vm2227_vm5, %v2070_v45  ;;  %v2019_v32 = vld [vmem:[%s2646_s2 + $0x90] sm:$0xff]  ;;  %v2054_v38 = vld [vmem:[%s2646_s2 + $0x1a8] sm:$0xff]  ;;  %v2037_v42 = vld [vmem:[%s2646_s2 + $0x120] sm:$0xff] }
  0x22   :  { %621 = vmatpush.bf16.msrb.mxu0 %v1976_v33  ;;  %1651 = vmatmul.msk.bf16.vlgmr.msra.gmra.mxu1 %vm2241_vm7, %v2070_v45  ;;  %v2027_v33 = vld [vmem:[%s2646_s2 + $0xd0] sm:$0xff]  ;;  %v2062_v39 = vld [vmem:[%s2646_s2 + $0x1e8] sm:$0xff] }
  0x23   :  { %634 = vmatpush.bf16.msrb.mxu1 %v1984_v34  ;;  %1653 = vmatmul.msk.bf16.vlgmr.msra.gmra.mxu2 %vm2222_vm3, %v2070_v45  ;;  %v2002_v34 = vld [vmem:[%s2646_s2 + $0x8] sm:$0xff] }
  0x24   :  { %647 = vmatpush.bf16.msrb.mxu2 %v1992_v35  ;;  %1655 = vmatmul.msk.bf16.vlgmr.msra.gmra.mxu3 %vm2231_vm6, %v2070_v45  ;;  %v2010_v35 = vld [vmem:[%s2646_s2 + $0x48] sm:$0xff] }
  0x25   :  { %660 = vmatpush.bf16.msrb.mxu3 %v2000_v36  ;;  %v2018_v36 = vld [vmem:[%s2646_s2 + $0x88] sm:$0xff] }
  0x26   :  { %622 = vmatpush.bf16.msrb.mxu0 %v1975_v40  ;;  %v2026_v40 = vld [vmem:[%s2646_s2 + $0xc8] sm:$0xff] }
  0x27   :  { %635 = vmatpush.bf16.msrb.mxu1 %v1983_v41  ;;  %v2001_v41 = vld [vmem:[%s2646_s2] sm:$0xff] }
  0x28   :  { %648 = vmatpush.bf16.msrb.mxu2 %v1991_v43  ;;  %v2009_v43 = vld [vmem:[%s2646_s2 + $0x40] sm:$0xff] }
  0x29   :  { %661 = vmatpush.bf16.msrb.mxu3 %v1999_v44  ;;  %v2017_v44 = vld [vmem:[%s2646_s2 + $0x80] sm:$0xff] }
  0x2a   :  { %623 = vmatpush.bf16.msrb.mxu0 %v1974_v46  ;;  %v2025_v46 = vld [vmem:[%s2646_s2 + $0xc0] sm:$0xff] }
  0x2b   :  { %636 = vmatpush.bf16.msrb.mxu1 %v1982_v47  ;;  %v2040_v47 = vld [vmem:[%s2646_s2 + $0x138] sm:$0xff] }
  0x2c   :  { %649 = vmatpush.bf16.msrb.mxu2 %v1990_v48  ;;  %v2048_v48 = vld [vmem:[%s2646_s2 + $0x178] sm:$0xff] }
  0x2d   :  { %662 = vmatpush.bf16.msrb.mxu3 %v1998_v49  ;;  %v2056_v49 = vld [vmem:[%s2646_s2 + $0x1b8] sm:$0xff] }
  0x2e   :  { %624 = vmatpush.bf16.msrb.mxu0 %v1973_v50  ;;  %v2064_v50 = vld [vmem:[%s2646_s2 + $0x1f8] sm:$0xff] }
  0x2f   :  { %637 = vmatpush.bf16.msrb.mxu1 %v1981_v51  ;;  %v2039_v51 = vld [vmem:[%s2646_s2 + $0x130] sm:$0xff] }
  0x30   :  { %650 = vmatpush.bf16.msrb.mxu2 %v1989_v52  ;;  %v2047_v52 = vld [vmem:[%s2646_s2 + $0x170] sm:$0xff] }
  0x31   :  { %663 = vmatpush.bf16.msrb.mxu3 %v1997_v53  ;;  %v2055_v53 = vld [vmem:[%s2646_s2 + $0x1b0] sm:$0xff] }
  0x32   :  { %625 = vmatpush.bf16.msrb.mxu0 %v1972_v54  ;;  %v2063_v54 = vld [vmem:[%s2646_s2 + $0x1f0] sm:$0xff] }
  0x33   :  { %638 = vmatpush.bf16.msrb.mxu1 %v1980_v55  ;;  %v2038_v55 = vld [vmem:[%s2646_s2 + $0x128] sm:$0xff] }
  0x34   :  { %651 = vmatpush.bf16.msrb.mxu2 %v1988_v56  ;;  %v2045_v56 = vld [vmem:[%s2646_s2 + $0x160] sm:$0xff] }
  0x35   :  { %664 = vmatpush.bf16.msrb.mxu3 %v1996_v57  ;;  %v2053_v57 = vld [vmem:[%s2646_s2 + $0x1a0] sm:$0xff] }
  0x36   :  { %626 = vmatpush.bf16.msrb.mxu0 %v1971_v58  ;;  %v2061_v58 = vld [vmem:[%s2646_s2 + $0x1e0] sm:$0xff] }
  0x37   :  { %639 = vmatpush.bf16.msrb.mxu1 %v1979_v59  ;;  %v2036_v59 = vld [vmem:[%s2646_s2 + $0x118] sm:$0xff] }
  0x38   :  { %652 = vmatpush.bf16.msrb.mxu2 %v1987_v60  ;;  %v2044_v60 = vld [vmem:[%s2646_s2 + $0x158] sm:$0xff] }
  0x39   :  { %665 = vmatpush.bf16.msrb.mxu3 %v1995_v61  ;;  %v2052_v61 = vld [vmem:[%s2646_s2 + $0x198] sm:$0xff] }
  0x3a   :  { %627 = vmatpush.bf16.msrb.mxu0 %v1970_v62  ;;  %v2060_v62 = vld [vmem:[%s2646_s2 + $0x1d8] sm:$0xff] }
  0x3b   :  { %640 = vmatpush.bf16.msrb.mxu1 %v1978_v63  ;;  %v2035_v63 = vld [vmem:[%s2646_s2 + $0x110] sm:$0xff] }
  0x3c   :  { %653 = vmatpush.bf16.msrb.mxu2 %v1986_v0  ;;  %v2043_v0 = vld [vmem:[%s2646_s2 + $0x150] sm:$0xff] }
  0x3d   :  { %666 = vmatpush.bf16.msrb.mxu3 %v1994_v1  ;;  %v2051_v1 = vld [vmem:[%s2646_s2 + $0x190] sm:$0xff] }
  0x3e   :  { %628 = vmatpush.bf16.msrb.mxu0 %v1969_v2  ;;  %v2059_v2 = vld [vmem:[%s2646_s2 + $0x1d0] sm:$0xff] }
  0x3f   :  { %641 = vmatpush.bf16.msrb.mxu1 %v1977_v3  ;;  %v2034_v3 = vld [vmem:[%s2646_s2 + $0x108] sm:$0xff] }
  0x40   :  { %654 = vmatpush.bf16.msrb.mxu2 %v1985_v4  ;;  %v2042_v4 = vld [vmem:[%s2646_s2 + $0x148] sm:$0xff] }
  0x41   :  { %667 = vmatpush.bf16.msrb.mxu3 %v1993_v5  ;;  %1657 = vmatmul.msk.bf16.vlgmr.msrb.gmra.mxu0 %vm2355_vm13, %v2070_v45  ;;  %v2050_v5 = vld [vmem:[%s2646_s2 + $0x188] sm:$0xff] }
  0x42   :  { %1189 = vmatpush.bf16.msra.mxu0 %v2008_v6  ;;  %1659 = vmatmul.msk.bf16.vlgmr.msrb.gmra.mxu1 %vm2369_vm15, %v2070_v45  ;;  %v2058_v6 = vld [vmem:[%s2646_s2 + $0x1c8] sm:$0xff] }
  0x43   :  { %1202 = vmatpush.bf16.msra.mxu1 %v2016_v7  ;;  %1661 = vmatmul.msk.bf16.vlgmr.msrb.gmra.mxu2 %vm2350_vm11, %v2070_v45  ;;  %v2033_v7 = vld [vmem:[%s2646_s2 + $0x100] sm:$0xff] }
  0x44   :  { %1215 = vmatpush.bf16.msra.mxu2 %v2024_v8  ;;  %1663 = vmatmul.msk.bf16.vlgmr.msrb.gmra.mxu3 %vm2359_vm14, %v2070_v45  ;;  %v2041_v8 = vld [vmem:[%s2646_s2 + $0x140] sm:$0xff] }
  0x45   :  { %1228 = vmatpush.bf16.msra.mxu3 %v2032_v9  ;;  %v2049_v9 = vld [vmem:[%s2646_s2 + $0x180] sm:$0xff] }
  0x46   :  { %1190 = vmatpush.bf16.msra.mxu0 %v2007_v13  ;;  %v2057_v13 = vld [vmem:[%s2646_s2 + $0x1c0] sm:$0xff] }
  0x47   :  { %1203 = vmatpush.bf16.msra.mxu1 %v2015_v14 }
  0x48   :  { %1216 = vmatpush.bf16.msra.mxu2 %v2023_v16 }
  0x49   :  { %1229 = vmatpush.bf16.msra.mxu3 %v2031_v17 }
  0x4a   :  { %1191 = vmatpush.bf16.msra.mxu0 %v2006_v18 }
  0x4b   :  { %1204 = vmatpush.bf16.msra.mxu1 %v2014_v19 }
  0x4c   :  { %1217 = vmatpush.bf16.msra.mxu2 %v2022_v20 }
  0x4d   :  { %1230 = vmatpush.bf16.msra.mxu3 %v2030_v21 }
  0x4e   :  { %1192 = vmatpush.bf16.msra.mxu0 %v2005_v22 }
  0x4f   :  { %1205 = vmatpush.bf16.msra.mxu1 %v2013_v23 }
  0x50   :  { %1218 = vmatpush.bf16.msra.mxu2 %v2021_v24 }
  0x51   :  { %1231 = vmatpush.bf16.msra.mxu3 %v2029_v25 }
  0x52   :  { %1193 = vmatpush.bf16.msra.mxu0 %v2004_v26 }
  0x53   :  { %1206 = vmatpush.bf16.msra.mxu1 %v2012_v27 }
  0x54   :  { %1219 = vmatpush.bf16.msra.mxu2 %v2020_v28 }
  0x55   :  { %1232 = vmatpush.bf16.msra.mxu3 %v2028_v29 }
  0x56   :  { %1194 = vmatpush.bf16.msra.mxu0 %v2003_v30 }
  0x57   :  { %1207 = vmatpush.bf16.msra.mxu1 %v2011_v31 }
  0x58   :  { %1220 = vmatpush.bf16.msra.mxu2 %v2019_v32 }
  0x59   :  { %1233 = vmatpush.bf16.msra.mxu3 %v2027_v33 }
  0x5a   :  { %1195 = vmatpush.bf16.msra.mxu0 %v2002_v34 }
  0x5b   :  { %1208 = vmatpush.bf16.msra.mxu1 %v2010_v35 }
  0x5c   :  { %1221 = vmatpush.bf16.msra.mxu2 %v2018_v36 }
  0x5d   :  { %1234 = vmatpush.bf16.msra.mxu3 %v2026_v40 }
  0x5e   :  { %1196 = vmatpush.bf16.msra.mxu0 %v2001_v41 }
  0x5f   :  { %1209 = vmatpush.bf16.msra.mxu1 %v2009_v43 }
  0x60   :  { %1222 = vmatpush.bf16.msra.mxu2 %v2017_v44 }
  0x61   :  { %1235 = vmatpush.bf16.msra.mxu3 %v2025_v46  ;;  %1921 = vmatmul.msk.bf16.vlgmr.msra.gmra.mxu0 %vm2227_vm5, %v2070_v45 }
  0x62   :  { %1241 = vmatpush.bf16.msrb.mxu0 %v2040_v47  ;;  %1923 = vmatmul.msk.bf16.vlgmr.msra.gmra.mxu1 %vm2241_vm7, %v2070_v45 }
  0x63   :  { %1254 = vmatpush.bf16.msrb.mxu1 %v2048_v48  ;;  %1925 = vmatmul.msk.bf16.vlgmr.msra.gmra.mxu2 %vm2222_vm3, %v2070_v45 }
  0x64   :  { %1267 = vmatpush.bf16.msrb.mxu2 %v2056_v49  ;;  %1927 = vmatmul.msk.bf16.vlgmr.msra.gmra.mxu3 %vm2231_vm6, %v2070_v45 }
  0x65   :  { %1280 = vmatpush.bf16.msrb.mxu3 %v2064_v50 }
  0x66   :  { %1242 = vmatpush.bf16.msrb.mxu0 %v2039_v51  ;;  %v1353_v51 = vld [vmem:[%s2649_s4 + $0x78] sm:$0xff] }
  0x67   :  { %1255 = vmatpush.bf16.msrb.mxu1 %v2047_v52  ;;  %v1352_v52 = vld [vmem:[%s2649_s4 + $0x70] sm:$0xff] }
  0x68   :  { %1268 = vmatpush.bf16.msrb.mxu2 %v2055_v53 }
  0x69   :  { %1281 = vmatpush.bf16.msrb.mxu3 %v2063_v54  ;;  %v2066_v54 = vld [vmem:[%s2647_s3] ss:$0 sm:$0xff] }
  0x6a   :  { %1243 = vmatpush.bf16.msrb.mxu0 %v2038_v55 }
  0x6b   :  { %1256 = vmatpush.bf16.msrb.mxu1 %v2046_v37  ;;  %v1351_v37 = vld [vmem:[%s2649_s4 + $0x68] sm:$0xff] }
  0x6c   :  { %1269 = vmatpush.bf16.msrb.mxu2 %v2054_v38 }
  0x6d   :  { %1282 = vmatpush.bf16.msrb.mxu3 %v2062_v39 }
  0x6e   :  { %1244 = vmatpush.bf16.msrb.mxu0 %v2037_v42 }
  0x6f   :  { %1257 = vmatpush.bf16.msrb.mxu1 %v2045_v56 }
  0x70   :  { %1270 = vmatpush.bf16.msrb.mxu2 %v2053_v57 }
  0x71   :  { %1283 = vmatpush.bf16.msrb.mxu3 %v2061_v58  ;;  %v1350_v58 = vld [vmem:[%s2649_s4 + $0x60] sm:$0xff] }
  0x72   :  { %1245 = vmatpush.bf16.msrb.mxu0 %v2036_v59 }
  0x73   :  { %1258 = vmatpush.bf16.msrb.mxu1 %v2044_v60 }
  0x74   :  { %1271 = vmatpush.bf16.msrb.mxu2 %v2052_v61  ;;  %v1349_v61 = vld [vmem:[%s2649_s4 + $0x58] sm:$0xff] }
  0x75   :  { %1284 = vmatpush.bf16.msrb.mxu3 %v2060_v62 }
  0x76   :  { %1246 = vmatpush.bf16.msrb.mxu0 %v2035_v63  ;;  %v1348_v63 = vld [vmem:[%s2649_s4 + $0x50] sm:$0xff] }
  0x77   :  { %1259 = vmatpush.bf16.msrb.mxu1 %v2043_v0 }
  0x78   :  { %1272 = vmatpush.bf16.msrb.mxu2 %v2051_v1  ;;  %v1347_v1 = vld [vmem:[%s2649_s4 + $0x48] sm:$0xff] }
  0x79   :  { %1285 = vmatpush.bf16.msrb.mxu3 %v2059_v2 }
  0x7a   :  { %1247 = vmatpush.bf16.msrb.mxu0 %v2034_v3 }
  0x7b   :  { %1260 = vmatpush.bf16.msrb.mxu1 %v2042_v4 }
  0x7c   :  { %1273 = vmatpush.bf16.msrb.mxu2 %v2050_v5  ;;  %v1346_v5 = vld [vmem:[%s2649_s4 + $0x40] sm:$0xff] }
  0x7d   :  { %1286 = vmatpush.bf16.msrb.mxu3 %v2058_v6 }
  0x7e   :  { %1248 = vmatpush.bf16.msrb.mxu0 %v2033_v7  ;;  %v1345_v7 = vld [vmem:[%s2649_s4 + $0x38] sm:$0xff] }
  0x7f   :  { %1261 = vmatpush.bf16.msrb.mxu1 %v2041_v8 }
  0x80   :  { %1274 = vmatpush.bf16.msrb.mxu2 %v2049_v9 }
  0x81   :  { %1287 = vmatpush.bf16.msrb.mxu3 %v2057_v13  ;;  %1929 = vmatmul.msk.bf16.vlgmr.msrb.gmra.mxu0 %vm2355_vm13, %v2070_v45  ;;  %v1344_v13 = vld [vmem:[%s2649_s4 + $0x30] sm:$0xff] }
  0x82   :  { %1931 = vmatmul.msk.bf16.vlgmr.msrb.gmra.mxu1 %vm2369_vm15, %v2070_v45  ;;  %1358 = vmatpush.msra.mxu0 %v1353_v51 }
  0x83   :  { %1933 = vmatmul.msk.bf16.vlgmr.msrb.gmra.mxu2 %vm2350_vm11, %v2070_v45 }
  0x84   :  { %1935 = vmatmul.msk.bf16.vlgmr.msrb.gmra.mxu3 %vm2359_vm14, %v2070_v45  ;;  %1359 = vmatpush.msra.mxu0 %v1352_v52 }
  0x86   :  { %1360 = vmatpush.msra.mxu0 %v1351_v37 }
  0x88   :  { %1361 = vmatpush.msra.mxu0 %v1350_v58 }
  0x8a   :  { %1362 = vmatpush.msra.mxu0 %v1349_v61 }
  0x8c   :  { %1363 = vmatpush.msra.mxu0 %v1348_v63 }
  0x8e   :  { %1364 = vmatpush.msra.mxu0 %v1347_v1 }
  0x90   :  { %1365 = vmatpush.msra.mxu0 %v1346_v5 }
  0x92   :  { %1366 = vmatpush.msra.mxu0 %v1345_v7 }
  0x94   :  { %1367 = vmatpush.msra.mxu0 %v1344_v13 }
  0x9e   :  { %v578_v14 = vpop.f32.mrf.mxu0 }
  0x9f   :  { %v591_v16 = vpop.f32.mrf.mxu1 }
  0xa0   :  { %v592_v17 = vadd.f32 %v591_v16, %v578_v14 }
  0xa6   :  { %v604_v18 = vpop.f32.mrf.mxu2  ;;  %v580_v11 = vpop.f32.mrf.mxu0 }
  0xa7   :  { %v605_v19 = vadd.f32 %v604_v18, %v592_v17  ;;  %v617_v20 = vpop.f32.mrf.mxu3  ;;  %v593_v22 = vpop.f32.mrf.mxu1  ;;  %v1343_v17 = vld [vmem:[%s2649_s4 + $0x28] sm:$0xff] }
  0xa8   :  { %1368 = vmatpush.msra.mxu0 %v1343_v17 }
  0xa9   :  { %v618_v21 = vadd.f32 %v617_v20, %v605_v19  ;;  %v1342_v20 = vld [vmem:[%s2649_s4 + $0x20] sm:$0xff] }
  0xaa   :  { %1369 = vmatpush.msra.mxu0 %v1342_v20 }
  0xae   :  { %v606_v23 = vpop.f32.mrf.mxu2 }
  0xaf   :  { %v619_v15 = vpop.f32.mrf.mxu3 }
  0xb0   :  { %v1340_v15 = vld [vmem:[%s2649_s4 + $0x10] sm:$0xff] }
  0xbe   :  { %v630_v24 = vpop.f32.mrf.mxu0 }
  0xbf   :  { %v643_v25 = vpop.f32.mrf.mxu1  ;;  %v631_v41 = vadd.f32 %v630_v24, %v618_v21  ;;  %v1341_v21 = vld [vmem:[%s2649_s4 + $0x18] sm:$0xff] }
  0xc0   :  { %1370 = vmatpush.msra.mxu0 %v1341_v21 }
  0xc1   :  { %v644_v44 = vadd.f32 %v643_v25, %v631_v41  ;;  %v1339_v25 = vld [vmem:[%s2649_s4 + $0x8] sm:$0xff] }
  0xc2   :  { %1371 = vmatpush.msra.mxu0 %v1340_v15 }
  0xc4   :  { %1372 = vmatpush.msra.mxu0 %v1339_v25 }
  0xc6   :  { %v656_v26 = vpop.f32.mrf.mxu2  ;;  %v632_v27 = vpop.f32.mrf.mxu0 }
  0xc7   :  { %v669_v10 = vpop.f32.mrf.mxu3  ;;  %v645_v28 = vpop.f32.mrf.mxu1  ;;  %v657_v49 = vadd.f32 %v656_v26, %v644_v44 }
  0xc9   :  { %v670_v53 = vadd.f32 %v669_v10, %v657_v49  ;;  %v1338_v10 = vld [vmem:[%s2649_s4] sm:$0xff] }
  0xca   :  { %1373 = vmatpush.msra.mxu0 %v1338_v10 }
  0xcb   :  { %v676_v59 = vadd.f32 %v2066_v54, %v670_v53 }
  0xce   :  { %v658_v29 = vpop.f32.mrf.mxu2 }
  0xcf   :  { %v671_v12 = vpop.f32.mrf.mxu3 }
  0xde   :  { %v1198_v45 = vpop.f32.mrf.mxu0 }
  0xdf   :  { %v1211_v30 = vpop.f32.mrf.mxu1 }
  0xe0   :  { %v1212_v40 = vadd.f32 %v1211_v30, %v1198_v45 }
  0xe6   :  { %v1224_v31 = vpop.f32.mrf.mxu2  ;;  %v1200_v33 = vpop.f32.mrf.mxu0 }
  0xe7   :  { %v1237_v32 = vpop.f32.mrf.mxu3  ;;  %v1213_v34 = vpop.f32.mrf.mxu1  ;;  %v1225_v43 = vadd.f32 %v1224_v31, %v1212_v40 }
  0xe9   :  { %v1238_v46 = vadd.f32 %v1237_v32, %v1225_v43 }
  0xee   :  { %v1226_v35 = vpop.f32.mrf.mxu2 }
  0xef   :  { %v1239_v36 = vpop.f32.mrf.mxu3 }
  0xfe   :  { %v1250_v47 = vpop.f32.mrf.mxu0 }
  0xff   :  { %v1263_v48 = vpop.f32.mrf.mxu1  ;;  %v1251_v50 = vadd.f32 %v1250_v47, %v1238_v46 }
 0x101   :  { %v1264_v55 = vadd.f32 %v1263_v48, %v1251_v50 }
 0x106   :  { %v1276_v38 = vpop.f32.mrf.mxu2  ;;  %v1252_v56 = vpop.f32.mrf.mxu0 }
 0x107   :  { %v1289_v39 = vpop.f32.mrf.mxu3  ;;  %v1277_v42 = vadd.f32 %v1276_v38, %v1264_v55  ;;  %v1265_v57 = vpop.f32.mrf.mxu1  ;;  %v2067_v55 = vld [vmem:[%s2648_s5] ss:$0 sm:$0xff] }
 0x109   :  { %v1290_v60 = vadd.f32 %v1289_v39, %v1277_v42 }
 0x10b   :  { %v2601_v62 = vadd.f32 %v1290_v60, %v676_v59 }
 0x10d   :  { %v1295_v0 = vmul.f32 0.70710677, %v2601_v62  ;;  %v1294_v52 = vmul.f32 0.5, %v2601_v62 }
 0x10e   :  { %v1278_v2 = vpop.f32.mrf.mxu2 }
 0x10f   :  { %v1291_v3 = vpop.f32.mrf.mxu3  ;;  %v1296_v4 = vmul.f32 %v1295_v0, %v1295_v0 }
 0x111   :  { %v1297_v6 = vmin.f32 %v1296_v4, 16.0 }
 0x113   :  { %v1298_v8 = vmul.f32 2.1237322e-06, %v1297_v6  ;;  %v1309_v9 = vmul.f32 3.8918573e-05, %v1297_v6 }
 0x115   :  { %v1299_v14 = vadd.f32 0.00028619796, %v1298_v8  ;;  %v1310_v16 = vadd.f32 0.001143296, %v1309_v9 }
 0x117   :  { %v1300_v18 = vmul.f32 %v1299_v14, %v1297_v6  ;;  %v1311_v19 = vmul.f32 %v1310_v16, %v1297_v6 }
 0x119   :  { %v1312_v11 = vadd.f32 0.014752088, %v1311_v19  ;;  %v1301_v22 = vadd.f32 0.0036580483, %v1300_v18 }
 0x11b   :  { %v1313_v23 = vmul.f32 %v1312_v11, %v1297_v6  ;;  %v1302_v26 = vmul.f32 %v1301_v22, %v1297_v6 }
 0x11d   :  { %v1314_v24 = vadd.f32 0.112945676, %v1313_v23  ;;  %v1303_v29 = vadd.f32 0.05243302, %v1302_v26 }
 0x11f   :  { %v1315_v27 = vmul.f32 %v1314_v24, %v1297_v6  ;;  %v1304_v30 = vmul.f32 %v1303_v29, %v1297_v6 }
 0x121   :  { %v1316_v28 = vadd.f32 0.4994258, %v1315_v27  ;;  %v1305_v31 = vadd.f32 0.18741608, %v1304_v30 }
 0x123   :  { %v1317_v12 = vmul.f32 %v1316_v28, %v1297_v6  ;;  %v1306_v33 = vmul.f32 %v1305_v31, %v1297_v6 }
 0x125   :  { %v1318_v45 = vadd.f32 1.0, %v1317_v12  ;;  %v1307_v40 = vadd.f32 1.1283791, %v1306_v33 }
 0x127   :  { %2068 = vrcp.f32 %v1318_v45  ;;  %v1330_v36 = vand.u32 2147483648, %v1318_v45  ;;  %v1328_v43 = vand.u32 2147483647, %v1318_v45  ;;  %vm1324_vm1 = vweird.f32 %v1318_v45 }
 0x128   :  { %v1308_v47 = vmul.f32 %v1307_v40, %v1295_v0 }
 0x129   :  { %v1331_v46 = vor.u32 1.1754944e-38, %v1330_v36  ;;  %vm1329_vm3 = vcmp.eq.f32.partialorder %v1328_v43, 8.507059e+37 }
 0x12d   :  { %v2069_v32 = vpop.eup %2068 }
 0x12e   :  { %v1320_v34 = vmul.f32 %v2069_v32, %v1318_v45  ;;  %vm1325_vm0 = vweird.f32 %v2069_v32 }
 0x12f   :  { %vm1326_vm2 = vmor %vm1324_vm1, %vm1325_vm0 }
 0x130   :  { %v1321_v35 = vsub.f32 1.0, %v1320_v34 }
 0x132   :  { %v1322_v41 = vmul.f32 %v2069_v32, %v1321_v35 }
 0x134   :  { %v1323_v44 = vadd.f32 %v2069_v32, %v1322_v41 }
 0x136   :  { %v1327_v48 = vsel %vm1326_vm2, %v2069_v32, %v1323_v44 }
 0x137   :  { %v1332_v49 = vsel %vm1329_vm3, %v1331_v46, %v1327_v48 }
 0x138   :  { %v1333_v50 = vmul.f32 %v1332_v49, %v1308_v47 }
 0x13a   :  { %v1936_v51 = vclamps-f32 %v1333_v50, 1.0 }
 0x13c   :  { %v1336_v53 = vadd.f32 1.0, %v1936_v51 }
 0x13e   :  { %v1337_v54 = vmul.f32 %v1336_v53, %v1294_v52 }
 0x140   :  { %1374 = vmatmul.f32.vlgmr.msra.gmra.mxu0 %v1337_v54 }
 0x1bd   :  { %v1375_v37 = vpop.f32.mrf.mxu0 }
 0x1be   :  { %v1376_v38 = vadd.f32 %v2067_v55, %v1375_v37 }
 0x1c0   :  { %1379 = vst.msk [vmem:[%s2650_s6] sm:$0xff] %vm1378_vm4, %v1376_v38 }

</bundles_post_ra>
